<compile_context>
chip_gen: v6e
topology: v6e:2x2x1
jax: 0.10.0
libtpu: 0.0.40
codegen_flags: <defaults>
</compile_context>

<pallas_src>
import jax
import jax.numpy as jnp
from jax.experimental import pallas as pl
from jax.experimental.pallas import tpu as pltpu


# ---------------------------------------------------------------------------
# tiling helpers
# ---------------------------------------------------------------------------

_STATS_TARGET_BYTES = 2 * 1024 * 1024   # ~2 MiB x-block for the init reduction
_MAX_TILE_C = 1024                      # cap on sublane tile for the apply path


def _sublane_multiple(dtype):
    """Minimum legal sublane tile multiple for a dtype (8 f32, 16 bf16, 32 i8)."""
    itemsize = jnp.dtype(dtype).itemsize
    return max(8, 32 // itemsize)


def _choose_c_tile(c, dtype):
    """Channel (sublane) tile: full C when small (always layout-legal),
    otherwise the largest dtype-aligned tile under the cap (ragged tail is
    handled by Pallas block padding / masked writes)."""
    if c <= _MAX_TILE_C:
        return c
    mult = _sublane_multiple(dtype)
    return (_MAX_TILE_C // mult) * mult


def _choose_hw_tile(hw, rows, itemsize, target_bytes):
    """Lane tile: a multiple of 128 chosen from a byte budget, or the full
    H*W extent when it already fits (full-dim blocks are always layout-legal,
    even when H*W is not a multiple of 128)."""
    lanes = target_bytes // (itemsize * max(rows, 1))
    lanes = max(128, (lanes // 128) * 128)
    if hw <= lanes:
        return hw
    return lanes


def _apply_block_budget():
    """(block byte budget for the apply path, optional scoped-VMEM override).

    v7x-class parts (<= ~64 MiB VMEM per core but ~3.2 TB/s HBM): bigger blocks
    amortize the fixed per-grid-step overhead; raise the scoped-VMEM limit so
    the double-buffered in+out blocks fit.  v5e/v6e (128 MiB VMEM): 2 MiB
    blocks already sit near the HBM roofline and stay inside v5e's 16 MiB
    default scoped VMEM, so leave the limit alone.
    """
    try:
        vmem = getattr(pltpu.get_tpu_info(), "vmem_capacity_bytes", None)
        if vmem is not None and vmem <= 96 * 1024 * 1024:
            return 4 * 1024 * 1024, 48 * 1024 * 1024
    except Exception:
        pass
    return 2 * 1024 * 1024, None


# ---------------------------------------------------------------------------
# kernels / pallas_call wrappers
# ---------------------------------------------------------------------------

def _channel_stats(x3, shift_c):
    """Single streaming pass over x3 = (N, C, H*W).

    Returns per-channel (sum(x - shift), sum((x - shift)^2)) as two (C, 1)
    f32 arrays.  The kernel emits per-batch partials (N, C, 1) so the N axis
    can be megacore-parallel; the tiny N reduction happens in plain JAX.
    """
    n, c, hw = x3.shape
    itemsize = jnp.dtype(x3.dtype).itemsize
    t_hw = _choose_hw_tile(hw, c, itemsize, _STATS_TARGET_BYTES)
    n_hw = pl.cdiv(hw, t_hw)
    ragged = (hw % t_hw) != 0

    def kernel(shift_ref, x_ref, s1_ref, s2_ref):
        hi = pl.program_id(1)

        @pl.when(hi == 0)
        def _():
            s1_ref[...] = jnp.zeros_like(s1_ref)
            s2_ref[...] = jnp.zeros_like(s2_ref)

        # shifted accumulation in f32 keeps the single-pass variance stable
        x = x_ref[...].astype(jnp.float32) - shift_ref[...]
        if ragged:
            # mask the padded tail lanes so they don't pollute the accumulator
            col = jax.lax.broadcasted_iota(jnp.int32, x.shape, 1)
            x = jnp.where(hi * t_hw + col < hw, x, 0.0)
        s1_ref[...] += jnp.sum(x, axis=-1, keepdims=True)
        s2_ref[...] += jnp.sum(x * x, axis=-1, keepdims=True)

    cost = pl.CostEstimate(
        flops=4 * n * c * hw,
        transcendentals=0,
        bytes_accessed=x3.size * itemsize + 2 * n * c * 4 + c * 4,
    )

    s1, s2 = pl.pallas_call(
        kernel,
        out_shape=(jax.ShapeDtypeStruct((n, c, 1), jnp.float32),
                   jax.ShapeDtypeStruct((n, c, 1), jnp.float32)),
        grid=(n, n_hw),
        in_specs=[
            pl.BlockSpec((c, 1), lambda ni, hi: (0, 0)),                    # shift
            pl.BlockSpec((pl.Squeezed(), c, t_hw), lambda ni, hi: (ni, 0, hi)),
        ],
        out_specs=(
            pl.BlockSpec((pl.Squeezed(), c, 1), lambda ni, hi: (ni, 0, 0)),
            pl.BlockSpec((pl.Squeezed(), c, 1), lambda ni, hi: (ni, 0, 0)),
        ),
        compiler_params=pltpu.CompilerParams(
            dimension_semantics=("parallel", "arbitrary")),
        cost_estimate=cost,
    )(shift_c, x3)

    return jnp.sum(s1, axis=0), jnp.sum(s2, axis=0)   # (C, 1), (C, 1)


def _actnorm_apply_kernel(scale_ref, bias_ref, x_ref, y_ref):
    """Fused per-channel affine: y = scale * x + bias, written straight to the
    output block.  Compute happens in the promoted dtype (f32 for f32 params);
    the ragged tail of a padded block is discarded by Pallas' masked writes."""
    # TODO(synk): optionally cast scale/bias to bf16 for bf16 inputs on
    # v6e/v7x to halve vreg traffic; kept in f32 for v5e compatibility.
    y = scale_ref[...] * x_ref[...] + bias_ref[...]
    y_ref[...] = y.astype(y_ref.dtype)


def _actnorm_apply(x3, scale_c, bias_c):
    n, c, hw = x3.shape
    itemsize = jnp.dtype(x3.dtype).itemsize
    target_bytes, vmem_limit = _apply_block_budget()
    t_c = _choose_c_tile(c, x3.dtype)
    t_hw = _choose_hw_tile(hw, t_c, itemsize, target_bytes)
    grid = (n, pl.cdiv(c, t_c), pl.cdiv(hw, t_hw))

    cost = pl.CostEstimate(
        flops=2 * n * c * hw,
        transcendentals=0,
        bytes_accessed=2 * x3.size * itemsize + 2 * c * 4,
    )

    return pl.pallas_call(
        _actnorm_apply_kernel,
        out_shape=jax.ShapeDtypeStruct((n, c, hw), x3.dtype),
        grid=grid,
        in_specs=[
            pl.BlockSpec((t_c, 1), lambda ni, ci, hi: (ci, 0)),   # scale
            pl.BlockSpec((t_c, 1), lambda ni, ci, hi: (ci, 0)),   # bias
            pl.BlockSpec((pl.Squeezed(), t_c, t_hw),
                         lambda ni, ci, hi: (ni, ci, hi)),        # x
        ],
        out_specs=pl.BlockSpec((pl.Squeezed(), t_c, t_hw),
                               lambda ni, ci, hi: (ni, ci, hi)),
        compiler_params=pltpu.CompilerParams(
            dimension_semantics=("parallel", "parallel", "parallel"),
            vmem_limit_bytes=vmem_limit),
        cost_estimate=cost,
    )(scale_c, bias_c, x3)


# ---------------------------------------------------------------------------
# module wrapper
# ---------------------------------------------------------------------------

class ActNorm:
    """JAX/Pallas port of the PyTorch ActNorm module (forward pass only).

    Parameters start as bias = zeros(1, C, 1, 1), scale = ones(1, C, 1, 1),
    initialized = 0.  The first forward performs the data-dependent init
    (bias = -mean, scale = 1/(std + 1e-6), unbiased std over N*H*W per
    channel), exactly like the PyTorch module does on its first minibatch.

    Note: the first forward mutates Python state (self.bias/self.scale/
    self.initialized), so __call__ itself should not be wrapped in jax.jit.
    """

    def __init__(self, in_channels, scale=1.0):
        self.in_channels = in_channels
        self.scale_factor = scale  # unused in forward (matches PyTorch module)
        self.bias = jnp.zeros((1, in_channels, 1, 1), jnp.float32)
        self.scale = jnp.ones((1, in_channels, 1, 1), jnp.float32)
        self.initialized = False

    def __call__(self, x, if_logdet=True):
        if x.ndim != 4:
            # TODO(synk): 2-D input branch of get_shape() not supported here.
            raise ValueError("This Pallas ActNorm implementation expects NCHW input.")
        n, c, h, w = x.shape
        assert c == self.in_channels
        hw = h * w
        m = n * hw

        # free reshape: (N, C, H, W) -> (N, C, H*W); no transpose, no HBM copy
        x3 = x.reshape(n, c, hw)

        if not self.initialized:
            # single fused pass: per-channel sum / sum-of-squares of (x - shift)
            # with a per-channel shift (first element) for numerical safety
            shift_c = x3[0, :, 0:1].astype(jnp.float32)        # (C, 1), tiny read
            s1, s2 = _channel_stats(x3, shift_c)               # (C, 1) each, f32
            mean_c = shift_c + s1 / float(m)                   # (C, 1)
            var_c = (s2 - (s1 * s1) / float(m)) / float(m - 1)  # unbiased (torch.std)
            var_c = jnp.maximum(var_c, 0.0)
            std_c = jnp.sqrt(var_c)
            scale_c = 1.0 / (std_c + 1e-6)                     # (C, 1)
            bias_c = -mean_c                                   # (C, 1)
            # store new parameter values (as in self.bias.data.copy_)
            self.bias = bias_c.reshape(1, c, 1, 1)
            self.scale = scale_c.reshape(1, c, 1, 1)
            self.initialized = True
        else:
            scale_c = self.scale.reshape(c, 1)
            bias_c = self.bias.reshape(c, 1)

        y = _actnorm_apply(x3, scale_c, bias_c).reshape(n, c, h, w)

        if if_logdet:
            # logdet only depends on the (C,) scale vector -> plain JAX
            log_det = float(h * w) * jnp.sum(jnp.log(jnp.abs(scale_c)))
            return y, log_det
        return y


# ---------------------------------------------------------------------------
# reference + test
# ---------------------------------------------------------------------------

def _reference_first_forward(x):
    """Pure-JAX reference of the PyTorch forward on an uninitialized module."""
    n, c, h, w = x.shape
    flat = jnp.transpose(x, (1, 0, 2, 3)).reshape(c, -1)
    mean = jnp.mean(flat, axis=1)
    std = jnp.std(flat, axis=1, ddof=1)
    bias = (-mean).reshape(1, c, 1, 1)
    scale = (1.0 / (std + 1e-6)).reshape(1, c, 1, 1)
    y = scale * x + bias
    log_det = h * w * jnp.sum(jnp.log(jnp.abs(scale)))
    return y, log_det


if __name__ == "__main__":
    key = jax.random.PRNGKey(0)
    x = jax.random.normal(key, (2, 4, 16, 16), dtype=jnp.float32)

    layer = ActNorm(in_channels=4)
    y, log_det = layer(x)                      # first forward -> data-dependent init
    jax.block_until_ready((y, log_det))

    y_ref, ld_ref = _reference_first_forward(x)
    assert jnp.allclose(y, y_ref, rtol=1e-4, atol=1e-4), "init-path output mismatch"
    assert jnp.allclose(log_det, ld_ref, rtol=1e-4, atol=1e-4), "init-path logdet mismatch"

    # second forward now uses the stored (initialized) parameters
    y2, log_det2 = layer(x)
    jax.block_until_ready((y2, log_det2))
    assert jnp.allclose(y2, y_ref, rtol=1e-4, atol=1e-4), "apply-path output mismatch"
    assert jnp.allclose(log_det2, ld_ref, rtol=1e-4, atol=1e-4), "apply-path logdet mismatch"

    print("KERNEL_OK")
</pallas_src>

<mosaic_0001>
module attributes {stable_mosaic.version = 11 : i64} {
  func.func @kernel(%arg0: i32, %arg1: i32, %arg2: memref<4x1xf32, #tpu.memory_space<vmem>>, %arg3: memref<1x4x256xf32, #tpu.memory_space<vmem>>, %arg4: memref<1x4x1xf32, #tpu.memory_space<vmem>>, %arg5: memref<1x4x1xf32, #tpu.memory_space<vmem>>) attributes {dimension_semantics = [#tpu.dimension_semantics<parallel>, #tpu.dimension_semantics<arbitrary>], iteration_bounds = array<i64: 2, 1>, scalar_prefetch = 0 : i64, scratch_operands = 0 : i64, tpu.core_type = #tpu.core_type<tc>, window_params = [{pipeline_mode = #tpu.pipeline_mode<synchronous>, transform_indices = @transform_0, window_bounds = array<i64: 4, 1>}, {transform_indices = @transform_1, window_bounds = array<i64: 1, 4, 256>}, {transform_indices = @transform_2, window_bounds = array<i64: 1, 4, 1>}, {transform_indices = @transform_3, window_bounds = array<i64: 1, 4, 1>}]} {
    %c0_i32 = arith.constant 0 : i32
    %0 = arith.cmpi eq, %arg1, %c0_i32 : i32
    %1 = arith.extui %0 : i1 to i32
    %c0_i32_0 = arith.constant 0 : i32
    %2 = arith.cmpi ne, %1, %c0_i32_0 : i32
    scf.if %2 {
      %cst_18 = arith.constant 0.000000e+00 : f32
      %25 = vector.broadcast %cst_18 : f32 to vector<4x1xf32>
      %c0_19 = arith.constant 0 : index
      %c0_20 = arith.constant 0 : index
      %c0_21 = arith.constant 0 : index
      %26 = vector.load %arg4[%c0_19, %c0_20, %c0_21] : memref<1x4x1xf32, #tpu.memory_space<vmem>>, vector<1x4x1xf32>
      %27 = vector.shape_cast %26 : vector<1x4x1xf32> to vector<4x1xf32>
      %28 = vector.shape_cast %25 : vector<4x1xf32> to vector<1x4x1xf32>
      tpu.vector_store %arg4[%c0_19, %c0_20, %c0_21], %28 {strides = array<i32>} : memref<1x4x1xf32, #tpu.memory_space<vmem>>, vector<1x4x1xf32>,
      %cst_22 = arith.constant 0.000000e+00 : f32
      %29 = vector.broadcast %cst_22 : f32 to vector<4x1xf32>
      %c0_23 = arith.constant 0 : index
      %c0_24 = arith.constant 0 : index
      %c0_25 = arith.constant 0 : index
      %30 = vector.load %arg5[%c0_23, %c0_24, %c0_25] : memref<1x4x1xf32, #tpu.memory_space<vmem>>, vector<1x4x1xf32>
      %31 = vector.shape_cast %30 : vector<1x4x1xf32> to vector<4x1xf32>
      %32 = vector.shape_cast %29 : vector<4x1xf32> to vector<1x4x1xf32>
      tpu.vector_store %arg5[%c0_23, %c0_24, %c0_25], %32 {strides = array<i32>} : memref<1x4x1xf32, #tpu.memory_space<vmem>>, vector<1x4x1xf32>,
    } else {
    }
    %c0 = arith.constant 0 : index
    %c0_1 = arith.constant 0 : index
    %c0_2 = arith.constant 0 : index
    %3 = vector.load %arg3[%c0, %c0_1, %c0_2] : memref<1x4x256xf32, #tpu.memory_space<vmem>>, vector<1x4x256xf32>
    %4 = vector.shape_cast %3 : vector<1x4x256xf32> to vector<4x256xf32>
    %c0_3 = arith.constant 0 : index
    %c0_4 = arith.constant 0 : index
    %5 = vector.load %arg2[%c0_3, %c0_4] : memref<4x1xf32, #tpu.memory_space<vmem>>, vector<4x1xf32>
    %6 = vector.broadcast %5 : vector<4x1xf32> to vector<4x256xf32>
    %7 = arith.subf %4, %6 : vector<4x256xf32>
    %c0_5 = arith.constant 0 : index
    %c0_6 = arith.constant 0 : index
    %c0_7 = arith.constant 0 : index
    %8 = vector.load %arg4[%c0_5, %c0_6, %c0_7] : memref<1x4x1xf32, #tpu.memory_space<vmem>>, vector<1x4x1xf32>
    %9 = vector.shape_cast %8 : vector<1x4x1xf32> to vector<4x1xf32>
    %cst = arith.constant dense<0.000000e+00> : vector<4xf32>
    %10 = vector.multi_reduction <add>, %7, %cst [1] : vector<4x256xf32> to vector<4xf32>
    %11 = vector.shape_cast %10 : vector<4xf32> to vector<4x1xf32>
    %12 = arith.addf %9, %11 : vector<4x1xf32>
    %c0_8 = arith.constant 0 : index
    %c0_9 = arith.constant 0 : index
    %c0_10 = arith.constant 0 : index
    %13 = vector.load %arg4[%c0_8, %c0_9, %c0_10] : memref<1x4x1xf32, #tpu.memory_space<vmem>>, vector<1x4x1xf32>
    %14 = vector.shape_cast %13 : vector<1x4x1xf32> to vector<4x1xf32>
    %15 = vector.shape_cast %12 : vector<4x1xf32> to vector<1x4x1xf32>
    tpu.vector_store %arg4[%c0_8, %c0_9, %c0_10], %15 {strides = array<i32>} : memref<1x4x1xf32, #tpu.memory_space<vmem>>, vector<1x4x1xf32>,
    %c0_11 = arith.constant 0 : index
    %c0_12 = arith.constant 0 : index
    %c0_13 = arith.constant 0 : index
    %16 = vector.load %arg5[%c0_11, %c0_12, %c0_13] : memref<1x4x1xf32, #tpu.memory_space<vmem>>, vector<1x4x1xf32>
    %17 = vector.shape_cast %16 : vector<1x4x1xf32> to vector<4x1xf32>
    %18 = arith.mulf %7, %7 : vector<4x256xf32>
    %cst_14 = arith.constant dense<0.000000e+00> : vector<4xf32>
    %19 = vector.multi_reduction <add>, %18, %cst_14 [1] : vector<4x256xf32> to vector<4xf32>
    %20 = vector.shape_cast %19 : vector<4xf32> to vector<4x1xf32>
    %21 = arith.addf %17, %20 : vector<4x1xf32>
    %c0_15 = arith.constant 0 : index
    %c0_16 = arith.constant 0 : index
    %c0_17 = arith.constant 0 : index
    %22 = vector.load %arg5[%c0_15, %c0_16, %c0_17] : memref<1x4x1xf32, #tpu.memory_space<vmem>>, vector<1x4x1xf32>
    %23 = vector.shape_cast %22 : vector<1x4x1xf32> to vector<4x1xf32>
    %24 = vector.shape_cast %21 : vector<4x1xf32> to vector<1x4x1xf32>
    tpu.vector_store %arg5[%c0_15, %c0_16, %c0_17], %24 {strides = array<i32>} : memref<1x4x1xf32, #tpu.memory_space<vmem>>, vector<1x4x1xf32>,
    return
  }
  func.func @transform_0(%arg0: i32, %arg1: i32) -> (i32, i32) {
    %c0_i32 = arith.constant 0 : i32
    %c0_i32_0 = arith.constant 0 : i32
    %c0_i32_1 = arith.constant 0 : i32
    return %c0_i32, %c0_i32_0 : i32, i32
  }
  func.func @transform_1(%arg0: i32, %arg1: i32) -> (i32, i32, i32) {
    %c0_i32 = arith.constant 0 : i32
    %c0_i32_0 = arith.constant 0 : i32
    return %arg0, %c0_i32, %arg1 : i32, i32, i32
  }
  func.func @transform_2(%arg0: i32, %arg1: i32) -> (i32, i32, i32) {
    %c0_i32 = arith.constant 0 : i32
    %c0_i32_0 = arith.constant 0 : i32
    %c0_i32_1 = arith.constant 0 : i32
    return %arg0, %c0_i32, %c0_i32_0 : i32, i32, i32
  }
  func.func @transform_3(%arg0: i32, %arg1: i32) -> (i32, i32, i32) {
    %c0_i32 = arith.constant 0 : i32
    %c0_i32_0 = arith.constant 0 : i32
    %c0_i32_1 = arith.constant 0 : i32
    return %arg0, %c0_i32, %c0_i32_0 : i32, i32, i32
  }
}

</mosaic_0001>

<bundles_post_ra>
// kernel: tpu_custom_call.1
= control target key start
LH: loop header
LB: loop body
LE: loop exit
PB: predicated region body
PF: predicated region fallthrough
CT: control target
= control target key end

     0   :  { %9 = vsyncpa [#allocation3], 0  ;;  %s664_s0 = inlined_call_operand.vmem [shape: f32[4,1], index: 0, kind: input, shape index: {}]   ;;  %s665_s1 = inlined_call_operand.hbm [shape: f32[2,4,256], index: 1, kind: input, shape index: {}]   ;;  %s666_s2 = inlined_call_operand.vmem [shape: f32[2,4,1], index: 2, kind: output, shape index: {0}]   ;;  %s667_s3 = inlined_call_operand.vmem [shape: f32[2,4,1], index: 3, kind: output, shape index: {1}]  }
   0x1   :  { %11 = vsyncpa [#allocation3 + $0x1], 0  ;;  %s546_s12 = smov 0   ;;  %s548_s13 = smov 0  }
   0x2   :  { %s550_s14 = smov 0   ;;  %s552_s15 = smov 0  }
   0x3   :  { %s554_s16 = smov 0   ;;  %s556_s17 = smov 0  }
   0x4 LB: > { %s369_s18 = sadd.s32 4294967295, %s520_s17   ;;  %s29_s19 = sadd.s32 1, %s516_s16  ;;  %s520_s17 = sphi %s556_s17, %s17_s17   ;;  %s516_s16 = sphi %s554_s16, %s675_s16   ;;  %s512_s15 = sphi %s552_s15, %s674_s15   ;;  %s508_s14 = sphi %s550_s14, %s673_s14   ;;  %s504_s13 = sphi %s548_s13, %s672_s13   ;;  %s500_s12 = sphi %s546_s12, %s671_s12  }
   0x5   : > { %p31_p0 = scmp.ge.s32.totalorder %s29_s19, 2  ;;  %s59_s20 = sadd.s32 1, %s508_s14 }
   0x6   : > { %p66_p1 = scmp.ne.s32.totalorder %s508_s14, %s504_s13  ;;  %p67_p2 = scmp.eq.s32.totalorder %s520_s17, 0 }
   0x7   : > { %s677_s19 = smov (%p31_p0, %s29_s19), 0  ;;  %p72_p4 = scmp.ne.s32.totalorder %s504_s13, %s500_s12 }
   0x8   : > { %p582_p3 = por %p67_p2, %p66_p1  ;;  %s54_s22 = ssub.s32 %s516_s16, %s677_s19 }
   0x9   : > { %p73_p5 = scmp.eq.s32.totalorder %s369_s18, 0  ;;  %p57_p6 = scmp.eq.s32.totalorder %s54_s22, 0 }
   0xa   : > { %p389_p8 = scmp.lt.s32.totalorder %s520_s17, 2  ;;  %s151_s25 = sand.u32 1, %s508_s14  }
   0xb   : > { %p589_p7 = por %p73_p5, %p72_p4  ;;  %s382_s26 = sshll.u32 %s516_s16, 7 }
   0xc   : > { %s595_s24 = scalar_select %p57_p6, %s508_s14, %s59_s20  }
   0xd   : > { %s373_s27 = sshll.u32 %s151_s25, 3  ;;  %s163_s30 = scalar_lea.hbm %s665_s1, %s382_s26 }
   0xe   : > { %s155_s4 = scalar_lea.vmem [#allocation2], %s373_s27  ;;  %p604_p9 = pnand %p389_p8, %p582_p3 }
   0xf   : > { %s165_s5 = sshll.u32 %s155_s4, 4  ;;  %p376_p10 = scmp.ge.s32.totalorder %s520_s17, 1  ;;  %s166_s5 = int_to_ptr.vmem [resolvable:$true] %s165_s5 }
  0x10   : > { %p170_p11 = scmp.lt.s32.totalorder %s520_s17, 3  ;;  %s152_s7 = scalar_lea.sflag [#allocation3], %s151_s25 }
  0x11   : > { %p444_p12 = pneg %p604_p9  ;;  %s455_s8 = scalar_lea.vmem %s166_s5, 128 }
  0x12   : > { %p456_p13 = scmp.ne.s32.totalorder %s166_s5, %s455_s8  ;;  %s522_s9 = smov [#allocation2]  }
  0x13   : > { %s460_s10 = sshll.u32 %s522_s9, 4  ;;  %s461_s10 = int_to_ptr.vmem [resolvable:$false] %s460_s10 }
  0x14   : > { %p458_p0 = pnand %p456_p13, %p444_p12  ;;  %s462_s11 = scalar_lea.vmem %s461_s10, 256 }
  0x15   : > { %p463_p2 = scmp.lt.s32.totalorder %s166_s5, %s461_s10  ;;  %p464_p3 = scmp.lt.s32.totalorder %s462_s11, %s455_s8 }
  0x16   : > { %p459_p1 = pneg %p458_p0 }
  0x17   : > { %p465_p4 = por %p464_p3, %p463_p2 }
  0x19   : > { %p466_p5 = pnand %p465_p4, %p459_p1 }
  0x1b   : > { %469 = shalt.err (!%p466_p5)
}
  0x1c   : > { %388 = dma.hbm_to_vmem [thread:$0]  (!%p604_p9), %s163_s30, 128, %s166_s5, %s152_s7  }
  0x1d   : > { %p171_p6 = pnand %p376_p10, %p170_p11 }
  0x1e   : > { %s176_s12 = sand.u32 (!%p171_p6), 1, %s504_s13  }
  0x1f   : > { %174 = sbr.rel (%p171_p6) target bundleno = 315 (0x13b), region = 28  ;;  %s377_s18 = sshll.u32 (!%p171_p6), %s176_s12, 3 }
  0x20   : > { %s177_s20 = scalar_lea.sflag (!%p171_p6), [#allocation3], %s176_s12  ;;  %s180_s21 = scalar_lea.vmem (!%p171_p6), [#allocation2], %s377_s18 }
  0x24   : > { %495 = dma.done.wait (%p589_p7), %s177_s20, 128  }
  0x25   : > { %497 = vsyncadd (%p589_p7), %s177_s20, 4294967168  ;;  %v523_v0 = vmov 0   ;;  %v223_v1 = vld [vmem:[%s664_s0] sm:$0xf]  ;;  %p207_p8 = scmp.lt.s32.totalorder %s512_s15, 1  ;;  %vm219_vm0 = vcmask 3072   ;;  %v231_v5 = vlaneseq }
  0x26   : > { %441 = vset.pattern.permute.xlu0 %v523_v0  ;;  %v524_v2 = vmov 0.0   ;;  %v525_v3 = vmov 839922192   ;;  %v222_v10 = vld [vmem:[%s180_s21] sm:$0xff]  ;;  %vm241_vm1 = vcmask 1043456  }
  0x27   : > { %226 = vperm.xlu0 %441, %v223_v1   ;;  %s679_s15 = smov (!%p207_p8, %s512_s15), 1  ;;  %v229_v4 = vunpack.c.l.s4 %v525_v3  ;;  %v232_v7 = vshrl.u32 %v231_v5, 7 }
  0x28   : > { %s378_s26 = sshll.u32 %s679_s15, 2 }
  0x29   : > { %s634_s23 = scalar_lea.vmem %s666_s2, %s378_s26  ;;  %v230_v6 = vunpack.c.0.s8 %v229_v4  ;;  %s214_s30 = scalar_lea.vmem %s667_s3, %s378_s26 }
  0x2a   : > { %220 = vst.msk [vmem:[%s634_s23] sm:$0xf] %vm219_vm0, %v524_v2  ;;  %221 = vst.msk [vmem:[%s214_s30] sm:$0xf] %vm219_vm0, %v524_v2 }
  0x2b   : > { %v233_v8 = vsub.s32 %v230_v6, %v232_v7 }
  0x31   : > { %v237_v22 = vld [vmem:[%s634_s23] sm:$0xf] }
  0x32   : > { %v250_v24 = vld [vmem:[%s214_s30] sm:$0xf] }
  0xa2   : > { %v227_v9 = vpop.permute.xlu0 %226 }
  0xa3   : > { %v234_v11 = vrot.slane %v227_v9, %v233_v8 }
  0xa5   : > { %v236_v12 = vsub.f32 %v222_v10, %v234_v11 }
  0xa7   : > { %v239_v13 = vcombine.high %v236_v12, %v236_v12  ;;  %v251_v14 = vmul.f32 %v236_v12, %v236_v12  ;;  %v242_v15 = vsel %vm241_vm1, %v236_v12, 0.0 }
  0xa9   : > { %v243_v16 = vsel %vm241_vm1, %v239_v13, 0.0  ;;  %v253_v17 = vcombine.high %v251_v14, %v251_v14  ;;  %v255_v19 = vsel %vm241_vm1, %v251_v14, 0.0 }
  0xaa   : > { %v244_v18 = vadd.f32 %v243_v16, %v242_v15 }
  0xab   : > { %v256_v20 = vsel %vm241_vm1, %v253_v17, 0.0 }
  0xac   : > { %245 = vadd.xlane.f32.xlu0 %v244_v18  ;;  %v257_v21 = vadd.f32 %v256_v20, %v255_v19 }
  0xae   : > { %258 = vadd.xlane.f32.xlu1 %v257_v21 }
 0x135   : > { %v246_v23 = vpop.xlane.xlu0 %245 }
 0x136   : > { %v247_v25 = vadd.f32 %v246_v23, %v237_v22 }
 0x137   : > { %v259_v26 = vpop.xlane.xlu1 %258 }
 0x138   : > { %249 = vst.msk [vmem:[%s634_s23] sm:$0xf] %vm219_vm0, %v247_v25  ;;  %v260_v27 = vadd.f32 %v259_v26, %v250_v24 }
 0x13a   : > { %261 = vst.msk [vmem:[%s214_s30] sm:$0xf] %vm219_vm0, %v260_v27 }
 0x13b PF: > { %s17_s17 = sadd.s32 1, %s520_s17   ;;  %s671_s12 = smov %s504_s13 }
 0x13c   : > { %p14_p7 = scmp.ge.s32.totalorder %s17_s17, 4   ;;  %s672_s13 = smov %s508_s14 }
 0x13d   : > { %s673_s14 = smov %s595_s24  ;;  %s674_s15 = smov %s516_s16 }
 0x13e   : > { %s675_s16 = smov %s677_s19  ;;  %16 = sbr.rel (!%p14_p7) target bundleno = 4 (0x4), region = 84 }
 0x143   :  { %295 = vsyncpa [#allocation3], 1 }
 0x144   :  { %297 = vsyncpa [#allocation3 + $0x1], 1 }

</bundles_post_ra>
